<compile_context>
chip_gen: v7x
topology: tpu7x:2x2x1
jax: 0.10.0
libtpu: 0.0.40
codegen_flags: <defaults>
</compile_context>

<pallas_src>
import jax
import jax.numpy as jnp
from jax.experimental import pallas as pl
from jax.experimental.pallas import tpu as pltpu


def _make_kernel(*, n_batch, c_in, n_taps, l_in, lq_pad, pad_left):
    def kernel(x_ref, w_ref, b_ref, o_ref, xp_ref, slab_ref):
        # x_ref   : (N*C_in, L_in)        f32  raw input (no wrapper pad)
        # w_ref   : (S*C_out, T*C_in)     bf16 combined polyphase weight
        # b_ref   : (S*C_out, 1)          f32  bias replicated per phase
        # o_ref   : (S*C_out, N*Lq_pad)   f32  per-phase output slab
        # xp_ref  : (N*C_in, L_xp_pad)    bf16 scratch: zero-padded input
        # slab_ref: (T*C_in, N*Lq_pad)    bf16 scratch: tap-shifted copies

        # In-kernel zero padding (replaces wrapper jnp.pad -> 1x input traffic).
        xp_ref[...] = jnp.zeros_like(xp_ref)
        xp_ref[:, pad_left:pad_left + l_in] = x_ref[...].astype(xp_ref.dtype)

        # slab[u*C_in + c, n*Lq_pad + q] = xp[n*C_in + c, q + u]
        # Direct writes into scratch (no concatenate copy).  The lane shift of
        # the unaligned static source slice lowers to XLU rotates; every slab
        # element is written exactly once so no zero-init of slab is needed.
        for n in range(n_batch):
            for u in range(n_taps):
                slab_ref[u * c_in:(u + 1) * c_in,
                         n * lq_pad:(n + 1) * lq_pad] = (
                    xp_ref[n * c_in:(n + 1) * c_in, u:u + lq_pad])

        # Single wide bf16 matmul, f32 accumulation, fused bias epilogue.
        acc = jnp.dot(w_ref[...], slab_ref[...],
                      preferred_element_type=jnp.float32)
        o_ref[...] = (acc + b_ref[...]).astype(o_ref.dtype)

    return kernel


def transpose_conv_block(x, weight, bias, *, stride, padding, output_padding):
    """ConvTranspose1d matching PyTorch semantics.

    x: (N, C_in, L_in), weight: (C_in, C_out, K), bias: (C_out,)
    returns (N, C_out, L_out)
    """
    N, C_in, L_in = x.shape
    C_in_w, C_out, K = weight.shape
    assert C_in == C_in_w
    assert 0 <= output_padding < max(stride, 1)
    L_out = (L_in - 1) * stride - 2 * padding + K + output_padding

    # --- polyphase bookkeeping (static Python ints) ---
    # y[n, o, q*s + r] = sum_{m, c} x[n, c, q - m] * W[c, o, m*s + r + padding]
    M_lo = -((stride - 1 + padding) // stride)        # ceil(-(s-1+p)/s)
    M_hi = (K - 1 - padding) // stride                # floor((K-1-p)/s)
    T = M_hi - M_lo + 1                               # tap shifts per phase
    pad_left = M_hi

    Lq = pl.cdiv(L_out, stride)                       # outputs per phase
    Lq_pad = pl.cdiv(Lq, 128) * 128                   # lane-dense width
    L_xp_pad = pl.cdiv(max(Lq_pad + T - 1, pad_left + L_in), 128) * 128

    # --- combined polyphase weight W_all[r*C_out + o, u*C_in + c] (bf16) ---
    #     = W[c, o, (M_hi - u)*s + r + padding] when that kernel index is valid
    w_rows = []
    for r in range(stride):
        taps = []
        for u in range(T):
            kk = (M_hi - u) * stride + r + padding
            if 0 <= kk < K:
                taps.append(jnp.transpose(weight[:, :, kk]))          # (C_out, C_in)
            else:
                taps.append(jnp.zeros((C_out, C_in), weight.dtype))
        w_rows.append(jnp.concatenate(taps, axis=1))                  # (C_out, T*C_in)
    w_all = jnp.concatenate(w_rows, axis=0).astype(jnp.bfloat16)      # (s*C_out, T*C_in)
    b_all = jnp.tile(bias, stride).reshape(stride * C_out, 1).astype(jnp.float32)

    x2d = x.reshape(N * C_in, L_in)        # contiguous reshape, no data copy

    kernel = _make_kernel(n_batch=N, c_in=C_in, n_taps=T, l_in=L_in,
                          lq_pad=Lq_pad, pad_left=pad_left)

    out_slab = pl.pallas_call(
        kernel,
        out_shape=jax.ShapeDtypeStruct((stride * C_out, N * Lq_pad), jnp.float32),
        in_specs=[
            pl.BlockSpec(memory_space=pltpu.MemorySpace.VMEM),
            pl.BlockSpec(memory_space=pltpu.MemorySpace.VMEM),
            pl.BlockSpec(memory_space=pltpu.MemorySpace.VMEM),
        ],
        out_specs=pl.BlockSpec(memory_space=pltpu.MemorySpace.VMEM),
        scratch_shapes=[
            pltpu.VMEM((N * C_in, L_xp_pad), jnp.bfloat16),
            pltpu.VMEM((T * C_in, N * Lq_pad), jnp.bfloat16),
        ],
        compiler_params=pltpu.CompilerParams(vmem_limit_bytes=32 * 1024 * 1024),
    )(x2d, w_all, b_all)

    # --- interleave phases back into the L axis (cheap wrapper glue) ---
    # out_slab[r*C_out + o, n*Lq_pad + q] == y[n, o, q*stride + r]
    out = out_slab.reshape(stride, C_out, N, Lq_pad)
    out = jnp.transpose(out, (2, 1, 3, 0)).reshape(N, C_out, Lq_pad * stride)
    return out[:, :, :L_out].astype(x.dtype)


def _ref_tconv(x, weight, bias, *, stride, padding, output_padding):
    """Naive pure-JAX reference of nn.ConvTranspose1d for correctness check."""
    N, C_in, L_in = x.shape
    _, C_out, K = weight.shape
    L_out = (L_in - 1) * stride - 2 * padding + K + output_padding
    L_full = (L_in - 1) * stride + K
    y_full = jnp.zeros((N, C_out, L_full + output_padding), jnp.float32)
    for li in range(L_in):
        for k in range(K):
            contrib = jnp.einsum('nc,co->no', x[:, :, li], weight[:, :, k])
            y_full = y_full.at[:, :, li * stride + k].add(contrib)
    y = y_full[:, :, padding:padding + L_out]
    return y + bias.reshape(1, C_out, 1)


if __name__ == "__main__":
    # Module config.  The PyTorch code only defines `output_padding` when
    # stride > 1, so stride > 1 is assumed.
    in_channels, out_channels, kernel_size, stride = 4, 8, 3, 2
    padding = kernel_size // 2
    output_padding = stride // 2

    N, L_in = 2, 16
    key = jax.random.PRNGKey(0)
    kx, kw, kb = jax.random.split(key, 3)
    x = jax.random.normal(kx, (N, in_channels, L_in), jnp.float32)

    # PyTorch ConvTranspose1d weight shape: (in_channels, out_channels, K)
    fan = in_channels * kernel_size
    bound = 1.0 / (fan ** 0.5)
    weight = jax.random.uniform(kw, (in_channels, out_channels, kernel_size),
                                jnp.float32, -bound, bound)
    bias = jax.random.uniform(kb, (out_channels,), jnp.float32, -bound, bound)

    out = transpose_conv_block(x, weight, bias, stride=stride, padding=padding,
                               output_padding=output_padding)
    out = jax.block_until_ready(out)

    expected_L = (L_in - 1) * stride - 2 * padding + kernel_size + output_padding
    assert out.shape == (N, out_channels, expected_L), out.shape

    ref = _ref_tconv(x, weight, bias, stride=stride, padding=padding,
                     output_padding=output_padding)
    # bf16 matmul inputs -> relaxed tolerance (review-approved).
    assert jnp.allclose(out, ref, atol=3e-2, rtol=3e-2), float(
        jnp.max(jnp.abs(out - ref)))

    print("KERNEL_OK")
</pallas_src>

<mosaic_0001>
module attributes {stable_mosaic.version = 11 : i64} {
  func.func @kernel(%arg0: memref<8x16xf32, #tpu.memory_space<vmem>>, %arg1: memref<16x8xbf16, #tpu.memory_space<vmem>>, %arg2: memref<16x1xf32, #tpu.memory_space<vmem>>, %arg3: memref<16x256xf32, #tpu.memory_space<vmem>>, %arg4: memref<8x256xbf16, #tpu.memory_space<vmem>>, %arg5: memref<8x256xbf16, #tpu.memory_space<vmem>>) attributes {dimension_semantics = [], scalar_prefetch = 0 : i64, scratch_operands = 2 : i64, tpu.core_type = #tpu.core_type<tc>} {
    %cst = arith.constant 0.000000e+00 : bf16
    %0 = vector.broadcast %cst : bf16 to vector<8x256xbf16>
    %c0 = arith.constant 0 : index
    %c0_0 = arith.constant 0 : index
    %1 = vector.load %arg4[%c0, %c0_0] : memref<8x256xbf16, #tpu.memory_space<vmem>>, vector<8x256xbf16>
    tpu.vector_store %arg4[%c0, %c0_0], %0 {strides = array<i32>} : memref<8x256xbf16, #tpu.memory_space<vmem>>, vector<8x256xbf16>,
    %c0_1 = arith.constant 0 : index
    %c0_2 = arith.constant 0 : index
    %2 = vector.load %arg0[%c0_1, %c0_2] : memref<8x16xf32, #tpu.memory_space<vmem>>, vector<8x16xf32>
    %3 = arith.truncf %2 : vector<8x16xf32> to vector<8x16xbf16>
    %c0_3 = arith.constant 0 : index
    %c0_4 = arith.constant 0 : index
    %4 = vector.load %arg4[%c0_3, %c0_4] : memref<8x256xbf16, #tpu.memory_space<vmem>>, vector<8x16xbf16>
    tpu.vector_store %arg4[%c0_3, %c0_4], %3 {strides = array<i32>} : memref<8x256xbf16, #tpu.memory_space<vmem>>, vector<8x16xbf16>,
    %c0_5 = arith.constant 0 : index
    %c0_6 = arith.constant 0 : index
    %5 = vector.load %arg4[%c0_5, %c0_6] : memref<8x256xbf16, #tpu.memory_space<vmem>>, vector<4x128xbf16>
    %c0_7 = arith.constant 0 : index
    %c0_8 = arith.constant 0 : index
    %6 = vector.load %arg5[%c0_7, %c0_8] : memref<8x256xbf16, #tpu.memory_space<vmem>>, vector<4x128xbf16>
    tpu.vector_store %arg5[%c0_7, %c0_8], %5 {strides = array<i32>} : memref<8x256xbf16, #tpu.memory_space<vmem>>, vector<4x128xbf16>,
    %c0_9 = arith.constant 0 : index
    %c1 = arith.constant 1 : index
    %7 = vector.load %arg4[%c0_9, %c1] : memref<8x256xbf16, #tpu.memory_space<vmem>>, vector<4x128xbf16>
    %c4 = arith.constant 4 : index
    %c0_10 = arith.constant 0 : index
    %8 = vector.load %arg5[%c4, %c0_10] : memref<8x256xbf16, #tpu.memory_space<vmem>>, vector<4x128xbf16>
    tpu.vector_store %arg5[%c4, %c0_10], %7 {strides = array<i32>} : memref<8x256xbf16, #tpu.memory_space<vmem>>, vector<4x128xbf16>,
    %c4_11 = arith.constant 4 : index
    %c0_12 = arith.constant 0 : index
    %9 = vector.load %arg4[%c4_11, %c0_12] : memref<8x256xbf16, #tpu.memory_space<vmem>>, vector<4x128xbf16>
    %c0_13 = arith.constant 0 : index
    %c128 = arith.constant 128 : index
    %10 = vector.load %arg5[%c0_13, %c128] : memref<8x256xbf16, #tpu.memory_space<vmem>>, vector<4x128xbf16>
    tpu.vector_store %arg5[%c0_13, %c128], %9 {strides = array<i32>} : memref<8x256xbf16, #tpu.memory_space<vmem>>, vector<4x128xbf16>,
    %c4_14 = arith.constant 4 : index
    %c1_15 = arith.constant 1 : index
    %11 = vector.load %arg4[%c4_14, %c1_15] : memref<8x256xbf16, #tpu.memory_space<vmem>>, vector<4x128xbf16>
    %c4_16 = arith.constant 4 : index
    %c128_17 = arith.constant 128 : index
    %12 = vector.load %arg5[%c4_16, %c128_17] : memref<8x256xbf16, #tpu.memory_space<vmem>>, vector<4x128xbf16>
    tpu.vector_store %arg5[%c4_16, %c128_17], %11 {strides = array<i32>} : memref<8x256xbf16, #tpu.memory_space<vmem>>, vector<4x128xbf16>,
    %c0_18 = arith.constant 0 : index
    %c0_19 = arith.constant 0 : index
    %13 = vector.load %arg1[%c0_18, %c0_19] : memref<16x8xbf16, #tpu.memory_space<vmem>>, vector<16x8xbf16>
    %c0_20 = arith.constant 0 : index
    %c0_21 = arith.constant 0 : index
    %14 = vector.load %arg5[%c0_20, %c0_21] : memref<8x256xbf16, #tpu.memory_space<vmem>>, vector<8x256xbf16>
    %cst_22 = arith.constant dense<0.000000e+00> : vector<16x256xf32>
    %15 = tpu.matmul %13, %14, %cst_22 {dimension_numbers = #tpu.dot_dimension_numbers<[1], [0], [0], [1], [0, 0, 1, 1], [], []>} : vector<16x8xbf16>, vector<8x256xbf16>, vector<16x256xf32> -> vector<16x256xf32>
    %c0_23 = arith.constant 0 : index
    %c0_24 = arith.constant 0 : index
    %16 = vector.load %arg2[%c0_23, %c0_24] : memref<16x1xf32, #tpu.memory_space<vmem>>, vector<16x1xf32>
    %17 = vector.broadcast %16 : vector<16x1xf32> to vector<16x256xf32>
    %18 = arith.addf %15, %17 : vector<16x256xf32>
    %c0_25 = arith.constant 0 : index
    %c0_26 = arith.constant 0 : index
    %19 = vector.load %arg3[%c0_25, %c0_26] : memref<16x256xf32, #tpu.memory_space<vmem>>, vector<16x256xf32>
    tpu.vector_store %arg3[%c0_25, %c0_26], %18 {strides = array<i32>} : memref<16x256xf32, #tpu.memory_space<vmem>>, vector<16x256xf32>,
    return
  }
}

</mosaic_0001>

<bundles_post_ra>
// kernel: tpu_custom_call.1
= control target key start
LH: loop header
LB: loop body
LE: loop exit
PB: predicated region body
PF: predicated region fallthrough
CT: control target
= control target key end

     0   :  { %vm19_vm0 = vcmask 125952   ;;  %v186_v1 = vmov 0   ;;  %s235_s0 = inlined_call_operand.vmem [shape: f32[8,16], index: 0, kind: input, shape index: {}]   ;;  %s236_s1 = inlined_call_operand.vmem [shape: bf16[16,8], index: 1, kind: input, shape index: {}]   ;;  %s237_s2 = inlined_call_operand.vmem [shape: f32[16,1], index: 2, kind: input, shape index: {}]   ;;  %s238_s3 = inlined_call_operand.hbm [shape: f32[16,256], index: 3, kind: output, shape index: {}]  }
   0x1   :  { %v17_v0 = vld [vmem:[%s235_s0] sm:$0xff]  ;;  %16 = vst [vmem:[#allocation2] sm:$0xff] %v186_v1  ;;  %115 = vmatprep.mubr.bf16.mxu0 %v186_v1  ;;  %157 = vset.pattern.permute.xlu1 %v186_v1 }
   0x2   :  { %v18_v2 = vpack.c.bf16 %v17_v0, %v17_v0 }
   0x3   :  { %8 = vsyncpa [#allocation5], 0  ;;  %158 = vset.pattern.permute.xlu0 %v186_v1  ;;  %s187_s14 = smov 127   ;;  %v50_v9 = vld [vmem:[%s237_s2] sm:$0xff]  ;;  %v51_v10 = vld [vmem:[%s237_s2 + $0x8] sm:$0xff]  ;;  %vm29_vm1 = vcmask 1039360  }
   0x4   :  { %20 = vst.msk [vmem:[#allocation2] sm:$0xf] %vm19_vm0, %v18_v2  ;;  %54 = vperm.xlu1 %157, %v50_v9   ;;  %vm76_vm2 = vcmask 1043456   ;;  %v161_v21 = vld [vmem:[%s236_s1] sm:$0xff]   ;;  %vm72_vm3 = vcmask 64512   ;;  %s188_s2 = smov [#allocation4]  }
   0x5   :  { %s135_s20 = sshll.u32 %s188_s2, 4  ;;  %s136_s20 = int_to_ptr.vmem [resolvable:$true] %s135_s20 }
   0x6   :  { %s162_s1 = scalar_lea.vmem %s136_s20, 512  ;;  %p167_p1 = scmp.lt.s32.totalorder %s136_s20, %s136_s20 }
   0x7   :  { %p163_p0 = scmp.ne.s32.totalorder %s136_s20, %s162_s1  ;;  %p168_p2 = scmp.lt.s32.totalorder %s162_s1, %s162_s1 }
   0x8   :  { %59 = vperm.xlu1 %157, %v51_v10  }
   0x9   :  { %p169_p3 = por %p168_p2, %p167_p1 }
   0xb   :  { %v23_v3 = vld [vmem:[#allocation2] sm:$0x33]  ;;  %v33_v6 = vld [vmem:[#allocation2] sm:$0xc]  ;;  %p170_p4 = pnand %p169_p3, %p163_p0 }
   0xc   :  { %v21_v4 = vld [vmem:[#allocation2] sm:$0x3]  ;;  %v25_v5 = vrot.slane %v23_v3, 6  ;;  %v146_v7 = vrot.slane %v33_v6, 10  ;;  %v39_v8 = vld [vmem:[#allocation2] sm:$0xcc] }
   0xd   :  { %22 = vst [vmem:[#allocation3] sm:$0x3] %v21_v4 }
   0xe   :  { %26 = vrot.lane.b32.xlu0 %v25_v5, %s187_s14  ;;  %38 = vst [vmem:[#allocation3 + $0x4] sm:$0x3] %v146_v7 }
  0x12   :  { %41 = vrot.lane.b32.xlu0 %v39_v8, %s187_s14 }
  0x80   :  { %v27_v11 = vpop.permute.xlu0 %26 }
  0x81   :  { %v28_v12 = vrot.slane %v27_v11, 4 }
  0x83   :  { %v30_v13 = vsel %vm29_vm1, %v27_v11, %v28_v12  ;;  %v55_v22 = vpop.permute.xlu1 %54 }
  0x84   :  { %32 = vst [vmem:[#allocation3] sm:$0xc] %v30_v13  ;;  %v42_v14 = vpop.permute.xlu0 %41 }
  0x85   :  { %v43_v15 = vrot.slane %v42_v14, 4 }
  0x87   :  { %v44_v16 = vsel %vm29_vm1, %v42_v14, %v43_v15  ;;  %v60_v26 = vpop.permute.xlu1 %59 }
  0x88   :  { %46 = vst [vmem:[#allocation3 + $0x4] sm:$0xc] %v44_v16 }
  0x8f   :  { %v49_v17 = vld [vmem:[#allocation3] sm:$0xff] }
  0x90   :  { %v149_v18 = vcombine.high %v49_v17, %v49_v17  ;;  %v148_v19 = vcombine.low %v49_v17, %v49_v17 }
  0x92   :  { %150 = vmatprep.subr.msk.bf16.mxu0 %vm76_vm2, %v149_v18  ;;  %v78_v20 = vsel %vm76_vm2, %v148_v19, 0 }
  0x93   :  { %84 = vmatpush1.bf16.msra.mxu0 %v78_v20 }
  0x96   :  { %151 = vmatmul.mubr.msk.bf16.vlgmr.msra.gmra.mrb[0].mxu0 %vm72_vm3, %v161_v21 }
 0x169   :  { %v117_v23 = vpop.f32.mrb[0].mxu0 }
 0x16a   :  { %v118_v24 = vadd.f32 %v117_v23, %v55_v22  ;;  %v119_v25 = vpop.f32.mrb[1].mxu0 }
 0x16b   :  { %v120_v27 = vadd.f32 %v119_v25, %v55_v22  ;;  %v121_v28 = vpop.f32.mrb[2].mxu0 }
 0x16c   :  { %126 = vst [vmem:[#allocation4] sm:$0xff] %v118_v24  ;;  %v122_v29 = vadd.f32 %v121_v28, %v60_v26  ;;  %v123_v30 = vpop.f32.mrb[3].mxu0 }
 0x16d   :  { %127 = vst [vmem:[#allocation4 + $0x8] sm:$0xff] %v120_v27  ;;  %v124_v31 = vadd.f32 %v123_v30, %v60_v26 }
 0x16e   :  { %128 = vst [vmem:[#allocation4 + $0x10] sm:$0xff] %v122_v29 }
 0x16f   :  { %129 = vst [vmem:[#allocation4 + $0x18] sm:$0xff] %v124_v31 }
 0x170   :  { %173 = shalt.err (!%p170_p4)
}
 0x171   :  { %s174_s23 = scalar_lea.hbm %s238_s3, 512 }
 0x172   :  { %p175_p5 = scmp.ne.s32.totalorder %s238_s3, %s174_s23  ;;  %p178_p6 = scmp.lt.u32.totalorder %s174_s23, %s238_s3 }
 0x174   :  { %p180_p7 = pnand %p178_p6, %p175_p5 }
 0x176   :  { %183 = shalt.err (!%p180_p7)
}
 0x177   :  { %s189_s28 = smov 256   ;;  %s190_s29 = smov 16  }
 0x178   :  { %141 = dma.vmem_to_hbm [thread:$0]  %s136_s20, 512, %s238_s3, [#allocation5], %s189_s28, %s189_s28, %s190_s29  }
 0x179   :  { %184 = dma.done.wait [#allocation5], 512  }
 0x17a   :  { %185 = vsyncadd [#allocation5], 4294966784 }
 0x17b   :  { %145 = vsyncpa [#allocation5], 1 }

</bundles_post_ra>
